<compile_context>
chip_gen: v5e
topology: v5e:2x2
jax: 0.10.0
libtpu: 0.0.40
codegen_flags: <defaults>
</compile_context>

<pallas_src>
import jax
import jax.numpy as jnp
from jax import lax
from jax.experimental import pallas as pl
from jax.experimental.pallas import tpu as pltpu

# ----------------------------- model sizes ---------------------------------
OUTPUT_DIM = 24      # trg vocab
DEC_EMB_DIM = 16
ENC_HID_DIM = 32
DEC_HID_DIM = 32

BATCH = 2
SRC_LEN = 8

VMEM_SPEC = pl.BlockSpec(memory_space=pltpu.MemorySpace.VMEM)


# ----------------------------- fused kernel ---------------------------------
def _decoder_step_kernel(tok_ref, hid_ref, enc_ref, mask_ref,
                         emb_ref,
                         wah_ref, wae_ref, ba_ref, v_ref,
                         wie_ref, wiw_ref, whh_ref, bih_ref, bhh_ref,
                         woh_ref, wow_ref, woe_ref, bo_ref,
                         pred_ref, hnew_ref, a_ref):
    B, S, E2 = enc_ref.shape
    Hd = hid_ref.shape[1]
    V = emb_ref.shape[0]

    hidden = hid_ref[...]                                   # [B, Hd]
    enc = enc_ref[...]                                      # [B, S, E2]

    # ---- embedding lookup as one-hot matmul (no gather) --------------------
    tok = tok_ref[...]                                      # [B, 1] int32
    onehot = (lax.broadcasted_iota(jnp.int32, (B, V), 1) == tok).astype(jnp.float32)
    embedded = jnp.dot(onehot, emb_ref[...],
                       preferred_element_type=jnp.float32)  # [B, EMB]
    # TODO(synk): nn.Dropout on `embedded` is identity here (inference mode).

    # ---- attention: tanh(hidden @ Wh + enc @ We + b), v-score, softmax ------
    e_h = (jnp.dot(hidden, wah_ref[...],
                   preferred_element_type=jnp.float32) + ba_ref[...])   # [B, Hd]
    enc2 = enc.reshape(B * S, E2)
    e_e = jnp.dot(enc2, wae_ref[...],
                  preferred_element_type=jnp.float32).reshape(B, S, Hd)
    energy = jnp.tanh(e_h[:, None, :] + e_e)                            # [B, S, Hd]
    scores = jnp.sum(energy * v_ref[...][None, :, :], axis=-1)          # [B, S]
    scores = jnp.where(mask_ref[...] > 0.5, scores, jnp.float32(-1e10))
    scores = scores - jnp.max(scores, axis=-1, keepdims=True)
    e = jnp.exp(scores)
    a = e * pl.reciprocal(jnp.sum(e, axis=-1, keepdims=True), approx=True)
    a_ref[...] = a                                                      # [B, S]

    weighted = jnp.sum(a[:, :, None] * enc, axis=1)                     # [B, E2]

    # ---- GRU cell: rnn_input = cat(embedded, weighted) -> split matmuls -----
    gi = (jnp.dot(embedded, wie_ref[...], preferred_element_type=jnp.float32)
          + jnp.dot(weighted, wiw_ref[...], preferred_element_type=jnp.float32)
          + bih_ref[...])                                               # [B, 3Hd]
    gh = (jnp.dot(hidden, whh_ref[...], preferred_element_type=jnp.float32)
          + bhh_ref[...])                                               # [B, 3Hd]
    r = jax.nn.sigmoid(gi[:, 0 * Hd:1 * Hd] + gh[:, 0 * Hd:1 * Hd])
    z = jax.nn.sigmoid(gi[:, 1 * Hd:2 * Hd] + gh[:, 1 * Hd:2 * Hd])
    n = jnp.tanh(gi[:, 2 * Hd:3 * Hd] + r * gh[:, 2 * Hd:3 * Hd])
    h_new = (1.0 - z) * n + z * hidden
    hnew_ref[...] = h_new                                               # [B, Hd]

    # ---- fc_out(cat(output, weighted, embedded)) as split matmuls -----------
    pred_ref[...] = (
        jnp.dot(h_new, woh_ref[...], preferred_element_type=jnp.float32)
        + jnp.dot(weighted, wow_ref[...], preferred_element_type=jnp.float32)
        + jnp.dot(embedded, woe_ref[...], preferred_element_type=jnp.float32)
        + bo_ref[...])                                                  # [B, V]


# ----------------------------- parameters -----------------------------------
def init_params(key):
    def normal(k, shape, scale=0.1):
        return (scale * jax.random.normal(k, shape)).astype(jnp.float32)

    V, E, Hd = OUTPUT_DIM, DEC_EMB_DIM, DEC_HID_DIM
    E2 = 2 * ENC_HID_DIM
    ks = iter(jax.random.split(key, 16))

    # --- PyTorch-layout weights ([out, in]) ----------------------------------
    emb = normal(next(ks), (V, E))
    attn_w = normal(next(ks), (Hd, Hd + E2))     # attn = Linear(Hd + E2, Hd)
    attn_b = normal(next(ks), (1, Hd))
    attn_v = normal(next(ks), (1, Hd))           # v = Linear(Hd, 1, bias=False)
    wih = normal(next(ks), (3 * Hd, E + E2))     # GRU input = cat(emb, weighted)
    whh = normal(next(ks), (3 * Hd, Hd))
    bih = normal(next(ks), (1, 3 * Hd))
    bhh = normal(next(ks), (1, 3 * Hd))
    out_w = normal(next(ks), (V, Hd + E2 + E))   # fc_out on cat(out, weighted, emb)
    out_b = normal(next(ks), (1, V))

    # --- host-side (once): pre-transpose + pre-split for the fused kernel ----
    return dict(
        emb=emb,
        attn_wh_t=jnp.asarray(attn_w[:, :Hd].T),        # [Hd, Hd]
        attn_we_t=jnp.asarray(attn_w[:, Hd:].T),        # [E2, Hd]
        attn_b=attn_b,
        attn_v=attn_v,                                  # [1, Hd]
        wih_e_t=jnp.asarray(wih[:, :E].T),              # [E,  3Hd]
        wih_w_t=jnp.asarray(wih[:, E:].T),              # [E2, 3Hd]
        whh_t=jnp.asarray(whh.T),                       # [Hd, 3Hd]
        bih=bih, bhh=bhh,
        wo_h_t=jnp.asarray(out_w[:, :Hd].T),            # [Hd, V]
        wo_w_t=jnp.asarray(out_w[:, Hd:Hd + E2].T),     # [E2, V]
        wo_e_t=jnp.asarray(out_w[:, Hd + E2:].T),       # [E,  V]
        out_b=out_b,
    )


# ----------------------------- wrapper ---------------------------------------
def make_decoder_forward(params):
    weights = (params['emb'],
               params['attn_wh_t'], params['attn_we_t'],
               params['attn_b'], params['attn_v'],
               params['wih_e_t'], params['wih_w_t'], params['whh_t'],
               params['bih'], params['bhh'],
               params['wo_h_t'], params['wo_w_t'], params['wo_e_t'],
               params['out_b'])

    @jax.jit
    def decoder_forward(input_tokens, hidden, encoder_outputs, mask):
        # encoder_outputs: [S, B, E2] -> [B, S, E2] (matches the module's permute)
        S, B, _ = encoder_outputs.shape
        enc_bse = jnp.transpose(encoder_outputs, (1, 0, 2))
        tok = input_tokens.reshape(B, 1).astype(jnp.int32)
        mask_f = mask.astype(jnp.float32)
        pred, h_new, a = pl.pallas_call(
            _decoder_step_kernel,
            in_specs=[VMEM_SPEC] * (4 + len(weights)),
            out_specs=(VMEM_SPEC, VMEM_SPEC, VMEM_SPEC),
            out_shape=(jax.ShapeDtypeStruct((B, OUTPUT_DIM), jnp.float32),
                       jax.ShapeDtypeStruct((B, DEC_HID_DIM), jnp.float32),
                       jax.ShapeDtypeStruct((B, S), jnp.float32)),
        )(tok, hidden, enc_bse, mask_f, *weights)
        # matches the module's return: (prediction, hidden.squeeze(0), a.squeeze(1))
        return pred, h_new, a

    return decoder_forward


# ----------------------------- main ------------------------------------------
if __name__ == "__main__":
    params = init_params(jax.random.PRNGKey(0))
    decoder_forward = make_decoder_forward(params)

    k1, k2, k3 = jax.random.split(jax.random.PRNGKey(0), 3)
    input_tokens = jax.random.randint(k1, (BATCH,), 0, OUTPUT_DIM, dtype=jnp.int32)
    hidden = (0.1 * jax.random.normal(k2, (BATCH, DEC_HID_DIM))).astype(jnp.float32)
    encoder_outputs = (0.1 * jax.random.normal(
        k3, (SRC_LEN, BATCH, 2 * ENC_HID_DIM))).astype(jnp.float32)
    # mask: 1.0 for valid src positions, 0.0 for padding
    lengths = jnp.array([SRC_LEN, SRC_LEN - 3], dtype=jnp.int32)
    mask = (jnp.arange(SRC_LEN)[None, :] < lengths[:, None]).astype(jnp.float32)

    pred, h_new, a = decoder_forward(input_tokens, hidden, encoder_outputs, mask)
    jax.block_until_ready((pred, h_new, a))

    assert pred.shape == (BATCH, OUTPUT_DIM)
    assert h_new.shape == (BATCH, DEC_HID_DIM)
    assert a.shape == (BATCH, SRC_LEN)
    assert bool(jnp.all(jnp.isfinite(pred)))
    assert bool(jnp.all(jnp.isfinite(h_new)))
    assert bool(jnp.all(jnp.isfinite(a)))
    # attention is a masked softmax: rows sum to ~1 and padded positions are ~0
    assert bool(jnp.allclose(jnp.sum(a, axis=-1), 1.0, atol=1e-2))
    assert bool(jnp.all(a[1, SRC_LEN - 3:] < 1e-6))
    print("KERNEL_OK")
</pallas_src>

<mosaic_0001>
module attributes {stable_mosaic.version = 11 : i64} {
  func.func @_decoder_step_kernel(%arg0: memref<2x1xi32, #tpu.memory_space<vmem>>, %arg1: memref<2x32xf32, #tpu.memory_space<vmem>>, %arg2: memref<2x8x64xf32, #tpu.memory_space<vmem>>, %arg3: memref<2x8xf32, #tpu.memory_space<vmem>>, %arg4: memref<24x16xf32, #tpu.memory_space<vmem>>, %arg5: memref<32x32xf32, #tpu.memory_space<vmem>>, %arg6: memref<64x32xf32, #tpu.memory_space<vmem>>, %arg7: memref<1x32xf32, #tpu.memory_space<vmem>>, %arg8: memref<1x32xf32, #tpu.memory_space<vmem>>, %arg9: memref<16x96xf32, #tpu.memory_space<vmem>>, %arg10: memref<64x96xf32, #tpu.memory_space<vmem>>, %arg11: memref<32x96xf32, #tpu.memory_space<vmem>>, %arg12: memref<1x96xf32, #tpu.memory_space<vmem>>, %arg13: memref<1x96xf32, #tpu.memory_space<vmem>>, %arg14: memref<32x24xf32, #tpu.memory_space<vmem>>, %arg15: memref<64x24xf32, #tpu.memory_space<vmem>>, %arg16: memref<16x24xf32, #tpu.memory_space<vmem>>, %arg17: memref<1x24xf32, #tpu.memory_space<vmem>>, %arg18: memref<2x24xf32, #tpu.memory_space<vmem>>, %arg19: memref<2x32xf32, #tpu.memory_space<vmem>>, %arg20: memref<2x8xf32, #tpu.memory_space<vmem>>) attributes {dimension_semantics = [], scalar_prefetch = 0 : i64, scratch_operands = 0 : i64, tpu.core_type = #tpu.core_type<tc>} {
    %c0 = arith.constant 0 : index
    %c0_0 = arith.constant 0 : index
    %0 = vector.load %arg1[%c0, %c0_0] : memref<2x32xf32, #tpu.memory_space<vmem>>, vector<2x32xf32>
    %c0_1 = arith.constant 0 : index
    %c0_2 = arith.constant 0 : index
    %c0_3 = arith.constant 0 : index
    %1 = vector.load %arg2[%c0_1, %c0_2, %c0_3] : memref<2x8x64xf32, #tpu.memory_space<vmem>>, vector<2x8x64xf32>
    %c0_4 = arith.constant 0 : index
    %c0_5 = arith.constant 0 : index
    %2 = vector.load %arg0[%c0_4, %c0_5] : memref<2x1xi32, #tpu.memory_space<vmem>>, vector<2x1xi32>
    %3 = tpu.iota {dimensions = array<i32: 1>} : vector<2x24xi32>
    %4 = vector.broadcast %2 : vector<2x1xi32> to vector<2x24xi32>
    %5 = arith.cmpi eq, %3, %4 : vector<2x24xi32>
    %6 = arith.extui %5 : vector<2x24xi1> to vector<2x24xi32>
    %7 = arith.sitofp %6 : vector<2x24xi32> to vector<2x24xf32>
    %c0_6 = arith.constant 0 : index
    %c0_7 = arith.constant 0 : index
    %8 = vector.load %arg4[%c0_6, %c0_7] : memref<24x16xf32, #tpu.memory_space<vmem>>, vector<24x16xf32>
    %cst = arith.constant dense<0.000000e+00> : vector<2x16xf32>
    %9 = tpu.matmul %7, %8, %cst {dimension_numbers = #tpu.dot_dimension_numbers<[1], [0], [0], [1], [0, 0, 1, 1], [], []>} : vector<2x24xf32>, vector<24x16xf32>, vector<2x16xf32> -> vector<2x16xf32>
    %c0_8 = arith.constant 0 : index
    %c0_9 = arith.constant 0 : index
    %10 = vector.load %arg5[%c0_8, %c0_9] : memref<32x32xf32, #tpu.memory_space<vmem>>, vector<32x32xf32>
    %cst_10 = arith.constant dense<0.000000e+00> : vector<2x32xf32>
    %11 = tpu.matmul %0, %10, %cst_10 {dimension_numbers = #tpu.dot_dimension_numbers<[1], [0], [0], [1], [0, 0, 1, 1], [], []>} : vector<2x32xf32>, vector<32x32xf32>, vector<2x32xf32> -> vector<2x32xf32>
    %c0_11 = arith.constant 0 : index
    %c0_12 = arith.constant 0 : index
    %12 = vector.load %arg7[%c0_11, %c0_12] : memref<1x32xf32, #tpu.memory_space<vmem>>, vector<1x32xf32>
    %13 = vector.broadcast %12 : vector<1x32xf32> to vector<2x32xf32>
    %14 = arith.addf %11, %13 : vector<2x32xf32>
    %15 = vector.shape_cast %1 : vector<2x8x64xf32> to vector<16x64xf32>
    %c0_13 = arith.constant 0 : index
    %c0_14 = arith.constant 0 : index
    %16 = vector.load %arg6[%c0_13, %c0_14] : memref<64x32xf32, #tpu.memory_space<vmem>>, vector<64x32xf32>
    %cst_15 = arith.constant dense<0.000000e+00> : vector<16x32xf32>
    %17 = tpu.matmul %15, %16, %cst_15 {dimension_numbers = #tpu.dot_dimension_numbers<[1], [0], [0], [1], [0, 0, 1, 1], [], []>} : vector<16x64xf32>, vector<64x32xf32>, vector<16x32xf32> -> vector<16x32xf32>
    %18 = vector.shape_cast %17 : vector<16x32xf32> to vector<2x8x32xf32>
    %19 = vector.shape_cast %14 : vector<2x32xf32> to vector<2x1x32xf32>
    %20 = vector.broadcast %19 : vector<2x1x32xf32> to vector<2x8x32xf32>
    %21 = arith.addf %20, %18 : vector<2x8x32xf32>
    %22 = math.tanh %21 : vector<2x8x32xf32>
    %c0_16 = arith.constant 0 : index
    %c0_17 = arith.constant 0 : index
    %23 = vector.load %arg8[%c0_16, %c0_17] : memref<1x32xf32, #tpu.memory_space<vmem>>, vector<1x32xf32>
    %24 = vector.shape_cast %23 : vector<1x32xf32> to vector<1x1x32xf32>
    %25 = vector.broadcast %24 : vector<1x1x32xf32> to vector<2x8x32xf32>
    %26 = arith.mulf %22, %25 : vector<2x8x32xf32>
    %cst_18 = arith.constant dense<0.000000e+00> : vector<2x8xf32>
    %27 = vector.multi_reduction <add>, %26, %cst_18 [2] : vector<2x8x32xf32> to vector<2x8xf32>
    %c0_19 = arith.constant 0 : index
    %c0_20 = arith.constant 0 : index
    %28 = vector.load %arg3[%c0_19, %c0_20] : memref<2x8xf32, #tpu.memory_space<vmem>>, vector<2x8xf32>
    %cst_21 = arith.constant 5.000000e-01 : f32
    %29 = vector.broadcast %cst_21 : f32 to vector<2x8xf32>
    %30 = arith.cmpf ogt, %28, %29 : vector<2x8xf32>
    %cst_22 = arith.constant -1.000000e+10 : f32
    %31 = vector.broadcast %cst_22 : f32 to vector<2x8xf32>
    %32 = arith.select %30, %27, %31 : vector<2x8xi1>, vector<2x8xf32>
    %cst_23 = arith.constant dense<0xFF800000> : vector<2xf32>
    %33 = vector.multi_reduction <maximumf>, %32, %cst_23 [1] : vector<2x8xf32> to vector<2xf32>
    %34 = vector.shape_cast %33 : vector<2xf32> to vector<2x1xf32>
    %35 = vector.broadcast %34 : vector<2x1xf32> to vector<2x8xf32>
    %36 = arith.subf %32, %35 : vector<2x8xf32>
    %37 = math.exp %36 : vector<2x8xf32>
    %cst_24 = arith.constant dense<0.000000e+00> : vector<2xf32>
    %38 = vector.multi_reduction <add>, %37, %cst_24 [1] : vector<2x8xf32> to vector<2xf32>
    %39 = vector.shape_cast %38 : vector<2xf32> to vector<2x1xf32>
    %40 = tpu.reciprocal %39 {approx = true} : vector<2x1xf32> -> vector<2x1xf32>
    %41 = vector.broadcast %40 : vector<2x1xf32> to vector<2x8xf32>
    %42 = arith.mulf %37, %41 : vector<2x8xf32>
    %c0_25 = arith.constant 0 : index
    %c0_26 = arith.constant 0 : index
    %43 = vector.load %arg20[%c0_25, %c0_26] : memref<2x8xf32, #tpu.memory_space<vmem>>, vector<2x8xf32>
    tpu.vector_store %arg20[%c0_25, %c0_26], %42 {strides = array<i32>} : memref<2x8xf32, #tpu.memory_space<vmem>>, vector<2x8xf32>,
    %44 = vector.shape_cast %42 : vector<2x8xf32> to vector<2x8x1xf32>
    %45 = vector.broadcast %44 : vector<2x8x1xf32> to vector<2x8x64xf32>
    %46 = arith.mulf %45, %1 : vector<2x8x64xf32>
    %cst_27 = arith.constant dense<0.000000e+00> : vector<2x64xf32>
    %47 = vector.multi_reduction <add>, %46, %cst_27 [1] : vector<2x8x64xf32> to vector<2x64xf32>
    %c0_28 = arith.constant 0 : index
    %c0_29 = arith.constant 0 : index
    %48 = vector.load %arg9[%c0_28, %c0_29] : memref<16x96xf32, #tpu.memory_space<vmem>>, vector<16x96xf32>
    %cst_30 = arith.constant dense<0.000000e+00> : vector<2x96xf32>
    %49 = tpu.matmul %9, %48, %cst_30 {dimension_numbers = #tpu.dot_dimension_numbers<[1], [0], [0], [1], [0, 0, 1, 1], [], []>} : vector<2x16xf32>, vector<16x96xf32>, vector<2x96xf32> -> vector<2x96xf32>
    %c0_31 = arith.constant 0 : index
    %c0_32 = arith.constant 0 : index
    %50 = vector.load %arg10[%c0_31, %c0_32] : memref<64x96xf32, #tpu.memory_space<vmem>>, vector<64x96xf32>
    %cst_33 = arith.constant dense<0.000000e+00> : vector<2x96xf32>
    %51 = tpu.matmul %47, %50, %cst_33 {dimension_numbers = #tpu.dot_dimension_numbers<[1], [0], [0], [1], [0, 0, 1, 1], [], []>} : vector<2x64xf32>, vector<64x96xf32>, vector<2x96xf32> -> vector<2x96xf32>
    %52 = arith.addf %49, %51 : vector<2x96xf32>
    %c0_34 = arith.constant 0 : index
    %c0_35 = arith.constant 0 : index
    %53 = vector.load %arg12[%c0_34, %c0_35] : memref<1x96xf32, #tpu.memory_space<vmem>>, vector<1x96xf32>
    %54 = vector.broadcast %53 : vector<1x96xf32> to vector<2x96xf32>
    %55 = arith.addf %52, %54 : vector<2x96xf32>
    %c0_36 = arith.constant 0 : index
    %c0_37 = arith.constant 0 : index
    %56 = vector.load %arg11[%c0_36, %c0_37] : memref<32x96xf32, #tpu.memory_space<vmem>>, vector<32x96xf32>
    %cst_38 = arith.constant dense<0.000000e+00> : vector<2x96xf32>
    %57 = tpu.matmul %0, %56, %cst_38 {dimension_numbers = #tpu.dot_dimension_numbers<[1], [0], [0], [1], [0, 0, 1, 1], [], []>} : vector<2x32xf32>, vector<32x96xf32>, vector<2x96xf32> -> vector<2x96xf32>
    %c0_39 = arith.constant 0 : index
    %c0_40 = arith.constant 0 : index
    %58 = vector.load %arg13[%c0_39, %c0_40] : memref<1x96xf32, #tpu.memory_space<vmem>>, vector<1x96xf32>
    %59 = vector.broadcast %58 : vector<1x96xf32> to vector<2x96xf32>
    %60 = arith.addf %57, %59 : vector<2x96xf32>
    %61 = vector.extract_strided_slice %55 {offsets = [0, 0], sizes = [2, 32], strides = [1, 1]} : vector<2x96xf32> to vector<2x32xf32>
    %62 = vector.extract_strided_slice %60 {offsets = [0, 0], sizes = [2, 32], strides = [1, 1]} : vector<2x96xf32> to vector<2x32xf32>
    %63 = arith.addf %61, %62 : vector<2x32xf32>
    %64 = arith.negf %63 : vector<2x32xf32>
    %65 = math.exp %64 : vector<2x32xf32>
    %cst_41 = arith.constant 1.000000e+00 : f32
    %66 = vector.broadcast %cst_41 : f32 to vector<2x32xf32>
    %67 = arith.addf %66, %65 : vector<2x32xf32>
    %68 = arith.divf %66, %67 : vector<2x32xf32>
    %69 = vector.extract_strided_slice %55 {offsets = [0, 32], sizes = [2, 32], strides = [1, 1]} : vector<2x96xf32> to vector<2x32xf32>
    %70 = vector.extract_strided_slice %60 {offsets = [0, 32], sizes = [2, 32], strides = [1, 1]} : vector<2x96xf32> to vector<2x32xf32>
    %71 = arith.addf %69, %70 : vector<2x32xf32>
    %72 = arith.negf %71 : vector<2x32xf32>
    %73 = math.exp %72 : vector<2x32xf32>
    %cst_42 = arith.constant 1.000000e+00 : f32
    %74 = vector.broadcast %cst_42 : f32 to vector<2x32xf32>
    %75 = arith.addf %74, %73 : vector<2x32xf32>
    %76 = arith.divf %74, %75 : vector<2x32xf32>
    %77 = vector.extract_strided_slice %55 {offsets = [0, 64], sizes = [2, 32], strides = [1, 1]} : vector<2x96xf32> to vector<2x32xf32>
    %78 = vector.extract_strided_slice %60 {offsets = [0, 64], sizes = [2, 32], strides = [1, 1]} : vector<2x96xf32> to vector<2x32xf32>
    %79 = arith.mulf %68, %78 : vector<2x32xf32>
    %80 = arith.addf %77, %79 : vector<2x32xf32>
    %81 = math.tanh %80 : vector<2x32xf32>
    %cst_43 = arith.constant 1.000000e+00 : f32
    %82 = vector.broadcast %cst_43 : f32 to vector<2x32xf32>
    %83 = arith.subf %82, %76 : vector<2x32xf32>
    %84 = arith.mulf %83, %81 : vector<2x32xf32>
    %85 = arith.mulf %76, %0 : vector<2x32xf32>
    %86 = arith.addf %84, %85 : vector<2x32xf32>
    %c0_44 = arith.constant 0 : index
    %c0_45 = arith.constant 0 : index
    %87 = vector.load %arg19[%c0_44, %c0_45] : memref<2x32xf32, #tpu.memory_space<vmem>>, vector<2x32xf32>
    tpu.vector_store %arg19[%c0_44, %c0_45], %86 {strides = array<i32>} : memref<2x32xf32, #tpu.memory_space<vmem>>, vector<2x32xf32>,
    %c0_46 = arith.constant 0 : index
    %c0_47 = arith.constant 0 : index
    %88 = vector.load %arg14[%c0_46, %c0_47] : memref<32x24xf32, #tpu.memory_space<vmem>>, vector<32x24xf32>
    %cst_48 = arith.constant dense<0.000000e+00> : vector<2x24xf32>
    %89 = tpu.matmul %86, %88, %cst_48 {dimension_numbers = #tpu.dot_dimension_numbers<[1], [0], [0], [1], [0, 0, 1, 1], [], []>} : vector<2x32xf32>, vector<32x24xf32>, vector<2x24xf32> -> vector<2x24xf32>
    %c0_49 = arith.constant 0 : index
    %c0_50 = arith.constant 0 : index
    %90 = vector.load %arg15[%c0_49, %c0_50] : memref<64x24xf32, #tpu.memory_space<vmem>>, vector<64x24xf32>
    %cst_51 = arith.constant dense<0.000000e+00> : vector<2x24xf32>
    %91 = tpu.matmul %47, %90, %cst_51 {dimension_numbers = #tpu.dot_dimension_numbers<[1], [0], [0], [1], [0, 0, 1, 1], [], []>} : vector<2x64xf32>, vector<64x24xf32>, vector<2x24xf32> -> vector<2x24xf32>
    %92 = arith.addf %89, %91 : vector<2x24xf32>
    %c0_52 = arith.constant 0 : index
    %c0_53 = arith.constant 0 : index
    %93 = vector.load %arg16[%c0_52, %c0_53] : memref<16x24xf32, #tpu.memory_space<vmem>>, vector<16x24xf32>
    %cst_54 = arith.constant dense<0.000000e+00> : vector<2x24xf32>
    %94 = tpu.matmul %9, %93, %cst_54 {dimension_numbers = #tpu.dot_dimension_numbers<[1], [0], [0], [1], [0, 0, 1, 1], [], []>} : vector<2x16xf32>, vector<16x24xf32>, vector<2x24xf32> -> vector<2x24xf32>
    %95 = arith.addf %92, %94 : vector<2x24xf32>
    %c0_55 = arith.constant 0 : index
    %c0_56 = arith.constant 0 : index
    %96 = vector.load %arg17[%c0_55, %c0_56] : memref<1x24xf32, #tpu.memory_space<vmem>>, vector<1x24xf32>
    %97 = vector.broadcast %96 : vector<1x24xf32> to vector<2x24xf32>
    %98 = arith.addf %95, %97 : vector<2x24xf32>
    %c0_57 = arith.constant 0 : index
    %c0_58 = arith.constant 0 : index
    %99 = vector.load %arg18[%c0_57, %c0_58] : memref<2x24xf32, #tpu.memory_space<vmem>>, vector<2x24xf32>
    tpu.vector_store %arg18[%c0_57, %c0_58], %98 {strides = array<i32>} : memref<2x24xf32, #tpu.memory_space<vmem>>, vector<2x24xf32>,
    return
  }
}

</mosaic_0001>

<bundles_post_ra>
// kernel: decoder_forward.1
= control target key start
LH: loop header
LB: loop body
LE: loop exit
PB: predicated region body
PF: predicated region fallthrough
CT: control target
= control target key end

     0   :  { %s1439_s0 = inlined_call_operand.vmem [shape: s32[2,1], index: 0, kind: input, shape index: {}]   ;;  %s1440_s1 = inlined_call_operand.hbm [shape: f32[2,32], index: 1, kind: input, shape index: {}]   ;;  %s1441_s2 = inlined_call_operand.vmem [shape: f32[2,8,64], index: 2, kind: input, shape index: {}]   ;;  %s1442_s3 = inlined_call_operand.hbm [shape: f32[2,8], index: 3, kind: input, shape index: {}]   ;;  %s1443_s4 = inlined_call_operand.hbm [shape: f32[24,16], index: 4, kind: input, shape index: {}]   ;;  %s1444_s5 = inlined_call_operand.hbm [shape: f32[32,32], index: 5, kind: input, shape index: {}]   ;;  %s1445_s6 = inlined_call_operand.hbm [shape: f32[64,32], index: 6, kind: input, shape index: {}]   ;;  %s1446_s7 = inlined_call_operand.hbm [shape: f32[1,32], index: 7, kind: input, shape index: {}]   ;;  %s1447_s8 = inlined_call_operand.hbm [shape: f32[1,32], index: 8, kind: input, shape index: {}]   ;;  %s1448_s9 = inlined_call_operand.hbm [shape: f32[16,96], index: 9, kind: input, shape index: {}]   ;;  %s1449_s10 = inlined_call_operand.hbm [shape: f32[64,96], index: 10, kind: input, shape index: {}]   ;;  %s1450_s11 = inlined_call_operand.hbm [shape: f32[32,96], index: 11, kind: input, shape index: {}]   ;;  %s1451_s12 = inlined_call_operand.hbm [shape: f32[1,96], index: 12, kind: input, shape index: {}]   ;;  %s1452_s13 = inlined_call_operand.hbm [shape: f32[1,96], index: 13, kind: input, shape index: {}]   ;;  %s1453_s14 = inlined_call_operand.vmem [shape: f32[32,24], index: 14, kind: input, shape index: {}]   ;;  %s1454_s15 = inlined_call_operand.hbm [shape: f32[64,24], index: 15, kind: input, shape index: {}]   ;;  %s1455_s16 = inlined_call_operand.vmem [shape: f32[16,24], index: 16, kind: input, shape index: {}]   ;;  %s1456_s17 = inlined_call_operand.vmem [shape: f32[1,24], index: 17, kind: input, shape index: {}]   ;;  %s1457_s18 = inlined_call_operand.hbm [shape: f32[2,24], index: 18, kind: output, shape index: {0}]   ;;  %s1458_s19 = inlined_call_operand.hbm [shape: f32[2,32], index: 19, kind: output, shape index: {1}]   ;;  %s1459_s20 = inlined_call_operand.hbm [shape: f32[2,8], index: 20, kind: output, shape index: {2}]  }
   0x1   :  { %1461 = sst [smem:[#allocation36_spill]] %s1439_s0 }
   0x2   :  { %1462 = sst [smem:[#allocation37_spill]] %s1440_s1 }
   0x3   :  { %1463 = sst [smem:[#allocation38_spill]] %s1441_s2 }
   0x4   :  { %1464 = sst [smem:[#allocation39_spill]] %s1442_s3 }
   0x5   :  { %1465 = sst [smem:[#allocation40_spill]] %s1443_s4 }
   0x6   :  { %26 = vsyncpa [#allocation3], 0 }
   0x7   :  { %27 = vsyncpa [#allocation6], 0 }
   0x8   :  { %28 = vsyncpa [#allocation9], 0 }
   0x9   :  { %29 = vsyncpa [#allocation12], 0 }
   0xa   :  { %30 = vsyncpa [#allocation15], 0 }
   0xb   :  { %31 = vsyncpa [#allocation18], 0 }
   0xc   :  { %32 = vsyncpa [#allocation21], 0 }
   0xd   :  { %33 = vsyncpa [#allocation4], 0  ;;  %s1466_s23 = sld [smem:[#allocation39_spill]] }
  0x13   :  { %s55_s24 = sshll.u32 %s1466_s23, 4  ;;  %s56_s24 = int_to_ptr.hbm [resolvable:$true] %s55_s24 }
  0x14   :  { %34 = vsyncpa [#allocation25], 0  ;;  %s1175_s2 = smov [#allocation5]   ;;  %s78_s27 = sshll.u32 %s1444_s5, 4  ;;  %s79_s27 = int_to_ptr.hbm [resolvable:$true] %s78_s27 }
  0x15   :  { %s57_s25 = sshll.u32 %s1175_s2, 4  ;;  %s1176_s28 = smov [#allocation8]   ;;  %s58_s25 = int_to_ptr.vmem [resolvable:$true] %s57_s25 }
  0x16   :  { %60 = dma.hbm_to_vmem [thread:$0]  %s56_s24, 32, %s58_s25, [#allocation6]  }
  0x17   :  { %s80_s4 = sshll.u32 %s1176_s28, 4  ;;  %s105_s0 = sshll.u32 %s1446_s7, 4  ;;  %s81_s4 = int_to_ptr.vmem [resolvable:$true] %s80_s4  ;;  %s106_s0 = int_to_ptr.hbm [resolvable:$true] %s105_s0 }
  0x18   :  { %s1177_s21 = smov 128   ;;  %s1178_s1 = smov 8  }
  0x19   :  { %86 = dma.hbm_to_vmem [thread:$0]  %s79_s27, 512, %s81_s4, [#allocation9], %s1177_s21, %s1177_s21, %s1178_s1  }
  0x1a   :  { %s126_s24 = sshll.u32 %s1448_s9, 4  ;;  %s1179_s5 = smov [#allocation11]   ;;  %s127_s24 = int_to_ptr.hbm [resolvable:$true] %s126_s24 }
  0x1b   :  { %s107_s2 = sshll.u32 %s1179_s5, 4  ;;  %s1180_s25 = smov [#allocation14]   ;;  %s108_s2 = int_to_ptr.vmem [resolvable:$true] %s107_s2 }
  0x1c   :  { %110 = dma.hbm_to_vmem [thread:$0]  %s106_s0, 16, %s108_s2, [#allocation12]  }
  0x1d   :  { %s128_s3 = sshll.u32 %s1180_s25, 4  ;;  %s152_s28 = sshll.u32 %s1450_s11, 4  ;;  %s129_s3 = int_to_ptr.vmem [resolvable:$true] %s128_s3  ;;  %s153_s28 = int_to_ptr.hbm [resolvable:$true] %s152_s28 }
  0x1e   :  { %134 = dma.hbm_to_vmem [thread:$0]  %s127_s24, 256, %s129_s3, [#allocation15], %s1177_s21, %s1177_s21, %s1178_s1  }
  0x1f   :  { %s177_s9 = sshll.u32 %s1452_s13, 4  ;;  %s1181_s29 = smov [#allocation17]   ;;  %s178_s9 = int_to_ptr.hbm [resolvable:$true] %s177_s9 }
  0x20   :  { %s154_s30 = sshll.u32 %s1181_s29, 4  ;;  %s1182_s0 = smov [#allocation20]   ;;  %s155_s30 = int_to_ptr.vmem [resolvable:$true] %s154_s30 }
  0x21   :  { %160 = dma.hbm_to_vmem [thread:$0]  %s153_s28, 512, %s155_s30, [#allocation18], %s1177_s21, %s1177_s21, %s1178_s1  }
  0x22   :  { %s179_s11 = sshll.u32 %s1182_s0, 4  ;;  %s1467_s5 = sld [smem:[#allocation37_spill]]  ;;  %s180_s11 = int_to_ptr.vmem [resolvable:$true] %s179_s11 }
  0x23   :  { %182 = dma.hbm_to_vmem [thread:$0]  %s178_s9, 16, %s180_s11, [#allocation21]  }
  0x24   :  { %s1468_s13 = sld [smem:[#allocation40_spill]]  ;;  %s1183_s7 = smov [#allocation2]  }
  0x25   :  { %s44_s26 = sshll.u32 %s1183_s7, 4  ;;  %s1184_s27 = smov [#allocation7]   ;;  %s45_s26 = int_to_ptr.vmem [resolvable:$true] %s44_s26 }
  0x26   :  { %s67_s28 = sshll.u32 %s1184_s27, 4  ;;  %s91_s30 = sshll.u32 %s1445_s6, 4  ;;  %s68_s28 = int_to_ptr.vmem [resolvable:$true] %s67_s28  ;;  %s92_s30 = int_to_ptr.hbm [resolvable:$true] %s91_s30 }
  0x27   :  { %s116_s11 = sshll.u32 %s1447_s8, 4  ;;  %s1185_s22 = smov [#allocation10]   ;;  %s117_s11 = int_to_ptr.hbm [resolvable:$true] %s116_s11 }
  0x28   :  { %s42_s2 = sshll.u32 %s1467_s5, 4  ;;  %s93_s23 = sshll.u32 %s1185_s22, 4  ;;  %s43_s2 = int_to_ptr.hbm [resolvable:$true] %s42_s2  ;;  %s94_s23 = int_to_ptr.vmem [resolvable:$true] %s93_s23 }
  0x29   :  { %47 = dma.hbm_to_vmem [thread:$0]  %s43_s2, 32, %s45_s26, [#allocation3]  }
  0x2a   :  { %s65_s3 = sshll.u32 %s1468_s13, 4  ;;  %s1186_s5 = smov [#allocation13]   ;;  %s66_s3 = int_to_ptr.hbm [resolvable:$true] %s65_s3 }
  0x2b   :  { %73 = dma.hbm_to_vmem [thread:$0]  %s66_s3, 384, %s68_s28, [#allocation6], %s1177_s21, %s1177_s21, %s1178_s1  }
  0x2c   :  { %99 = dma.hbm_to_vmem [thread:$0]  %s92_s30, 1024, %s94_s23, [#allocation9], %s1177_s21, %s1177_s21, %s1178_s1  }
  0x2d   :  { %s118_s6 = sshll.u32 %s1186_s5, 4  ;;  %s139_s25 = sshll.u32 %s1449_s10, 4  ;;  %s119_s6 = int_to_ptr.vmem [resolvable:$true] %s118_s6  ;;  %s140_s25 = int_to_ptr.hbm [resolvable:$true] %s139_s25 }
  0x2e   :  { %121 = dma.hbm_to_vmem [thread:$0]  %s117_s11, 16, %s119_s6, [#allocation12]  }
  0x2f   :  { %s166_s8 = sshll.u32 %s1451_s12, 4  ;;  %s1187_s7 = smov [#allocation16]   ;;  %s167_s8 = int_to_ptr.hbm [resolvable:$true] %s166_s8 }
  0x30   :  { %s141_s26 = sshll.u32 %s1187_s7, 4  ;;  %s1188_s27 = smov [#allocation19]   ;;  %s142_s26 = int_to_ptr.vmem [resolvable:$true] %s141_s26 }
  0x31   :  { %147 = dma.hbm_to_vmem [thread:$0]  %s140_s25, 1024, %s142_s26, [#allocation15], %s1177_s21, %s1177_s21, %s1178_s1  }
  0x32   :  { %s168_s28 = sshll.u32 %s1188_s27, 4  ;;  %s189_s10 = sshll.u32 %s1454_s15, 4  ;;  %s169_s28 = int_to_ptr.vmem [resolvable:$true] %s168_s28  ;;  %s190_s10 = int_to_ptr.hbm [resolvable:$true] %s189_s10 }
  0x33   :  { %171 = dma.hbm_to_vmem [thread:$0]  %s167_s8, 16, %s169_s28, [#allocation18]  }
  0x34   :  { %s1189_s30 = smov [#allocation22]  }
  0x35   :  { %s191_s9 = sshll.u32 %s1189_s30, 4  ;;  %s192_s9 = int_to_ptr.vmem [resolvable:$true] %s191_s9 }
  0x36   :  { %197 = dma.hbm_to_vmem [thread:$0]  %s190_s10, 1024, %s192_s9, [#allocation21], %s1177_s21, %s1177_s21, %s1178_s1  }
  0x37   :  { %1157 = dma.done.wait [#allocation3], 32  }
  0x38   :  { %1158 = vsyncadd [#allocation3], 4294967264 }
  0x39   :  { %1159 = dma.done.wait [#allocation6], 416  }
  0x3a   :  { %1160 = vsyncadd [#allocation6], 4294966880 }
  0x3b   :  { %1161 = dma.done.wait [#allocation9], 1536  }
  0x3c   :  { %1162 = vsyncadd [#allocation9], 4294965760 }
  0x3d   :  { %1163 = dma.done.wait [#allocation12], 32  }
  0x3e   :  { %1164 = vsyncadd [#allocation12], 4294967264 }
  0x3f   :  { %1165 = dma.done.wait [#allocation15], 1280  }
  0x40   :  { %1166 = vsyncadd [#allocation15], 4294966016 }
  0x41   :  { %1167 = dma.done.wait [#allocation18], 528  }
  0x42   :  { %1168 = vsyncadd [#allocation18], 4294966768 }
  0x43   :  { %1169 = dma.done.wait [#allocation21], 1040  }
  0x44   :  { %1170 = vsyncadd [#allocation21], 4294966256  ;;  %v332_v0 = vld [vmem:[#allocation10 + $0x38] sm:$0xff]  ;;  %v331_v1 = vld [vmem:[#allocation10 + $0x30] sm:$0xff]  ;;  %vm301_vm0 = vcmask 261120   ;;  %s1469_s21 = sld [smem:[#allocation38_spill]]  ;;  %v258_v34 = vlaneseq }
  0x45   :  { %348 = vmatpush.msra.mxu2 %v332_v0  ;;  %v296_v2 = vld [vmem:[#allocation8 + $0x18] sm:$0xff]  ;;  %v330_v3 = vld [vmem:[#allocation10 + $0x28] sm:$0xff]  ;;  %v295_v4 = vld [vmem:[#allocation8 + $0x10] sm:$0xff]  ;;  %vm333_vm1 = vcmask 523264   ;;  %s1470_s23 = sld [smem:[#allocation36_spill]]  ;;  %v1190_v18 = vmov 0  }
  0x46   :  { %317 = vmatpush.msra.mxu1 %v296_v2  ;;  %v294_v5 = vld [vmem:[#allocation8 + $0x8] sm:$0xff]  ;;  %v329_v6 = vld [vmem:[#allocation10 + $0x20] sm:$0xff]  ;;  %v328_v7 = vld [vmem:[#allocation10 + $0x18] sm:$0xff]  ;;  %751 = vset.pattern.permute.xlu1 %v1190_v18  ;;  %v259_v35 = vand.u32 127, %v258_v34  ;;  %v1191_v40 = vmov 0.0   ;;  %vm269_vm3 = vcmask 195584  }
  0x47   :  { %349 = vmatpush.msra.mxu2 %v331_v1  ;;  %v293_v8 = vld [vmem:[#allocation8] sm:$0xff]  ;;  %v327_v10 = vld [vmem:[#allocation10 + $0x10] sm:$0xff]  ;;  %v326_v11 = vld [vmem:[#allocation10 + $0x8] sm:$0xff]  ;;  %vm391_vm4 = vcmask 1041409   ;;  %vm395_vm6 = vcmask 58368   ;;  %vm473_vm7 = vcmask 130048  }
  0x48   :  { %318 = vmatpush.msra.mxu1 %v295_v4  ;;  %v1363_v9 = vld [vmem:[#allocation2] sm:$0x3]  ;;  %v754_v15 = vld [vmem:[#allocation11] ss:$0 sm:$0xff]  ;;  %v755_v24 = vld [vmem:[#allocation13] ss:$0 sm:$0xff] }
  0x49   :  { %350 = vmatpush.msra.mxu2 %v330_v3  ;;  %v325_v12 = vld [vmem:[#allocation10] sm:$0xff]  ;;  %v268_v36 = vld [vmem:[#allocation7 + $0x10] sm:$0xff]  ;;  %v267_v37 = vld [vmem:[#allocation7 + $0x8] sm:$0xff]  ;;  %v410_v58 = vshrl.u32 %v258_v34, 7  ;;  %s1192_s5 = smov 32   ;;  %s1193_s13 = smov 64  }
  0x4a   :  { %319 = vmatpush.msra.mxu1 %v294_v5  ;;  %v1370_v13 = vld [vmem:[%s1469_s21] sm:$0xff]  ;;  %v1377_v14 = vld [vmem:[%s1469_s21 + $0x8] sm:$0xff]  ;;  %286 = vmatpush.msra.mxu0 %v268_v36  ;;  %v503_v61 = vld [vmem:[#allocation17 + $0x8] sm:$0xff]  ;;  %vm576_vm12 = vcmask 254976   ;;  %s1195_s10 = smov [#allocation24]   ;;  %s1196_s15 = smov [#allocation26]  }
  0x4b   :  { %351 = vmatpush.msra.mxu2 %v329_v6  ;;  %v257_v16 = vld [vmem:[%s1470_s23] sm:$0x3]  ;;  %v266_v39 = vld [vmem:[#allocation7] sm:$0xff]  ;;  %v385_v43 = vld [vmem:[#allocation5] sm:$0x3]  ;;  %753 = vset.pattern.permute.xlu0 %v410_v58  ;;  %s678_s30 = sshll.u32 %s1195_s10, 4  ;;  %s679_s30 = int_to_ptr.vmem [resolvable:$true] %s678_s30 }
  0x4c   :  { %320 = vmatpush.msra.mxu1 %v293_v8  ;;  %261 = vperm.xlu1 %751, %v257_v16   ;;  %vm386_vm5 = vcmp.gt.f32.partialorder %v385_v43, 0.5  ;;  %v439_v50 = vld [vmem:[#allocation14 + $0x8] sm:$0xff]  ;;  %v438_v51 = vld [vmem:[#allocation14] sm:$0xff]  ;;  %v502_v62 = vld [vmem:[#allocation17] sm:$0xff]  ;;  %s689_s21 = sshll.u32 %s1196_s15, 4  ;;  %s691_s11 = sshll.u32 %s1459_s20, 4  ;;  %s690_s21 = int_to_ptr.vmem [resolvable:$true] %s689_s21  ;;  %s692_s11 = int_to_ptr.hbm [resolvable:$true] %s691_s11 }
  0x4d   :  { %352 = vmatpush.msra.mxu2 %v328_v7  ;;  %718 = vmatmul.msk.f32.vlgmr.msra.gmra.mxu1 %vm301_vm0, %v1363_v9  ;;  %v505_v59 = vld [vmem:[#allocation17 + $0x18] sm:$0xff]  ;;  %v504_v60 = vld [vmem:[#allocation17 + $0x10] sm:$0xff]  ;;  %v445_v8 = vld [vmem:[#allocation16 + $0x28] sm:$0xff]  ;;  %s669_s24 = sshll.u32 %s1457_s18, 4  ;;  %vm660_vm13 = vcmask 189440   ;;  %s670_s24 = int_to_ptr.hbm [resolvable:$true] %s669_s24 }
  0x4e   :  { %287 = vmatpush.msra.mxu0 %v267_v37  ;;  %752 = vset.pattern.permute.xlu2 %v410_v58  ;;  %v447_v4 = vld [vmem:[#allocation16 + $0x38] sm:$0xff]  ;;  %v446_v6 = vld [vmem:[#allocation16 + $0x30] sm:$0xff]  ;;  %v441_v18 = vld [vmem:[#allocation16 + $0x8] sm:$0xff] }
  0x4f   :  { %353 = vmatpush.msra.mxu2 %v327_v10  ;;  %522 = vmatpush.msrb.mxu1 %v505_v59  ;;  %v589_v5 = vld [vmem:[#allocation22 + $0x38] sm:$0xff]  ;;  %v588_v7 = vld [vmem:[#allocation22 + $0x30] sm:$0xff]  ;;  %v587_v10 = vld [vmem:[#allocation22 + $0x28] sm:$0xff] }
  0x50   :  { %288 = vmatpush.msra.mxu0 %v266_v39  ;;  %461 = vmatpush.msra.mxu3 %v447_v4  ;;  %v585_v16 = vld [vmem:[#allocation22 + $0x18] sm:$0xff]  ;;  %v581_v4 = vld [vmem:[%s1453_s14 + $0x18] sm:$0xff] }
  0x51   :  { %354 = vmatpush.msra.mxu2 %v326_v11  ;;  %523 = vmatpush.msrb.mxu1 %v504_v60  ;;  %v444_v11 = vld [vmem:[#allocation16 + $0x20] sm:$0xff] }
  0x52   :  { %491 = vmatpush.msrb.mxu0 %v439_v50  ;;  %462 = vmatpush.msra.mxu3 %v446_v6  ;;  %v579_v6 = vld [vmem:[%s1453_s14 + $0x8] sm:$0xff] }
  0x53   :  { %355 = vmatpush.msra.mxu2 %v325_v12  ;;  %524 = vmatpush.msrb.mxu1 %v503_v61  ;;  %v586_v12 = vld [vmem:[#allocation22 + $0x20] sm:$0xff] }
  0x54   :  { %719 = vmatmul.msk.f32.vlgmr.msra.gmra.mxu2 %vm333_vm1, %v1370_v13  ;;  %492 = vmatpush.msrb.mxu0 %v438_v51 }
  0x55   :  { %525 = vmatpush.msrb.mxu1 %v502_v62  ;;  %463 = vmatpush.msra.mxu3 %v445_v8 }
  0x56   :  { %723 = vmatmul.msk.f32.vlgmr.msrb.gmra.mxu1 %vm301_vm0, %v1363_v9 }
  0x57   :  { %464 = vmatpush.msra.mxu3 %v444_v11  ;;  %624 = vmatpush.msra.mxu1 %v581_v4 }
  0x5c   :  { %720 = vmatmul.msk.f32.gmra.mxu2 %vm333_vm1, %v1377_v14 }
  0xbe   :  { %v262_v38 = vpop.permute.xlu1 %261 }
  0xbf   :  { %vm263_vm2 = vcmp.eq.s32.totalorder %v259_v35, %v262_v38 }
  0xc0   :  { %v716_v41 = vsel %vm263_vm2, 1.0, %v1191_v40 }
  0xc1   :  { %717 = vmatmul.msk.f32.vlgmr.msra.gmra.mxu0 %vm269_vm3, %v716_v41 }
  0xc2   :  { %598 = vmatpush.msra.mxu0 %v589_v5  ;;  %v580_v5 = vld [vmem:[%s1453_s14 + $0x10] sm:$0xff] }
  0xc3   :  { %625 = vmatpush.msra.mxu1 %v580_v5 }
  0xc4   :  { %599 = vmatpush.msra.mxu0 %v588_v7  ;;  %v578_v7 = vld [vmem:[%s1453_s14] sm:$0xff]  ;;  %s680_s14 = sshll.u32 %s1458_s19, 4  ;;  %s1197_s19 = smov [#allocation23]   ;;  %s681_s14 = int_to_ptr.hbm [resolvable:$true] %s680_s14 }
  0xc5   :  { %626 = vmatpush.msra.mxu1 %v579_v6 }
  0xc6   :  { %600 = vmatpush.msra.mxu0 %v587_v10 }
  0xc7   :  { %627 = vmatpush.msra.mxu1 %v578_v7 }
  0xc8   :  { %601 = vmatpush.msra.mxu0 %v586_v12 }
  0xca   :  { %v322_v17 = vpop.f32.mrf.mxu1  ;;  %602 = vmatpush.msra.mxu0 %v585_v16 }
  0xcb   :  { %v323_v19 = vadd.f32 %v754_v15, %v322_v17  ;;  %v443_v15 = vld [vmem:[#allocation16 + $0x18] sm:$0xff] }
  0xcc   :  { %465 = vmatpush.msra.mxu3 %v443_v15  ;;  %v584_v17 = vld [vmem:[#allocation22 + $0x10] sm:$0xff] }
  0xcd   :  { %v365_v20 = vperm.slane %v323_v19, 0  ;;  %v364_v23 = vrot.slane %v323_v19, 1  ;;  %603 = vmatpush.msra.mxu0 %v584_v17  ;;  %v583_v19 = vld [vmem:[#allocation22 + $0x8] sm:$0xff] }
  0xcf   :  { %v366_v25 = vperm.slane %v364_v23, 0  ;;  %604 = vmatpush.msra.mxu0 %v583_v19  ;;  %v633_v23 = vld [vmem:[%s1455_s16 + $0x8] sm:$0xff] }
  0xd7   :  { %v357_v21 = vpop.f32.mrf.mxu2 }
  0xd8   :  { %v369_v22 = vadd.f32 %v365_v20, %v357_v21  ;;  %v440_v20 = vld [vmem:[#allocation16] sm:$0xff] }
  0xd9   :  { %v582_v21 = vld [vmem:[#allocation22] sm:$0xff] }
  0xda   :  { %759 = vtanh.f32 %v369_v22  ;;  %605 = vmatpush.msra.mxu0 %v582_v21 }
  0xdf   :  { %v360_v26 = vpop.f32.mrf.mxu2 }
  0xe0   :  { %v760_v27 = vpop.eup %759  ;;  %v370_v28 = vadd.f32 %v366_v25, %v360_v26 }
  0xe1   :  { %v377_v29 = vmul.f32 %v760_v27, %v755_v24  ;;  %v756_v27 = vld [vmem:[#allocation20] ss:$0 sm:$0xff] }
  0xe2   :  { %761 = vtanh.f32 %v370_v28  ;;  %v527_v28 = vpop.f32.mrf.mxu1 }
  0xe3   :  { %v379_v30 = vsel %vm301_vm0, %v377_v29, 0.0 }
  0xe4   :  { %380 = vadd.xlane.f32.xlu0 %v379_v30  ;;  %v528_v30 = vadd.f32 %v756_v27, %v527_v28 }
  0xe8   :  { %v762_v31 = vpop.eup %761 }
  0xe9   :  { %v378_v32 = vmul.f32 %v762_v31, %v755_v24  ;;  %v632_v24 = vld [vmem:[%s1455_s16] sm:$0xff]  ;;  %s1194_s16 = smov 96  }
  0xeb   :  { %v382_v33 = vsel %vm301_vm0, %v378_v32, 0.0 }
  0xec   :  { %383 = vadd.xlane.f32.xlu0 %v382_v33 }
 0x13e   :  { %v1388_v52 = vpop.f32.mrf.mxu0 }
 0x13f   :  { %722 = vmatmul.msk.f32.vlgmr.msrb.gmra.mxu0 %vm473_vm7, %v1388_v52 }
 0x157   :  { %v381_v42 = vpop.xlane.xlu0 %380 }
 0x158   :  { %v389_v45 = vperm.slane %v381_v42, %v259_v35 }
 0x15f   :  { %v384_v44 = vpop.xlane.xlu0 %383 }
 0x160   :  { %v390_v46 = vperm.slane %v384_v44, %v259_v35 }
 0x162   :  { %v392_v47 = vsel %vm391_vm4, %v390_v46, %v389_v45 }
 0x163   :  { %v394_v48 = vsel %vm386_vm5, %v392_v47, -1e+10 }
 0x164   :  { %v396_v49 = vsel %vm395_vm6, %v394_v48, -inf }
 0x165   :  { %397 = vmax.xlane.f32.xlu1 %v396_v49 }
 0x17e   :  { %567 = vrot.lane.b32.xlu1 %v1363_v9, %s1192_s5  ;;  %v442_v9 = vld [vmem:[#allocation16 + $0x10] sm:$0xff]  ;;  %s667_s5 = sshll.u32 %s1197_s19, 4  ;;  %s668_s5 = int_to_ptr.vmem [resolvable:$true] %s667_s5 }
 0x17f   :  { %466 = vmatpush.msra.mxu3 %v442_v9 }
 0x181   :  { %467 = vmatpush.msra.mxu3 %v441_v18 }
 0x183   :  { %468 = vmatpush.msra.mxu3 %v440_v20  ;;  %v758_v20 = vld [vmem:[%s1456_s17] ss:$0 sm:$0xff] }
 0x185   :  { %648 = vmatpush.msrb.mxu3 %v633_v23 }
 0x187   :  { %649 = vmatpush.msrb.mxu3 %v632_v24 }
 0x1bc   :  { %v494_v45 = vpop.f32.mrf.mxu0 }
 0x1d8   :  { %v398_v53 = vpop.xlane.xlu1 %397 }
 0x1d9   :  { %v399_v54 = vsub.f32 %v394_v48, %v398_v53 }
 0x1db   :  { %v400_v55 = vmul.f32 1.442695, %v399_v54 }
 0x1dd   :  { %763 = vpow2.f32 %v400_v55 }
 0x1e3   :  { %v764_v56 = vpop.eup %763 }
 0x1e4   :  { %v402_v57 = vsel %vm395_vm6, %v764_v56, 0.0 }
 0x1e5   :  { %403 = vadd.xlane.f32.xlu2 %v402_v57 }
 0x1f0   :  { %v568_v8 = vpop.permute.xlu1 %567 }
 0x258   :  { %v404_v63 = vpop.xlane.xlu2 %403 }
 0x259   :  { %765 = vrcp.f32 %v404_v63 }
 0x25f   :  { %v766_v0 = vpop.eup %765 }
 0x260   :  { %v406_v1 = vmul.f32 %v766_v0, %v764_v56 }
 0x262   :  { %407 = vst.msk [vmem:[#allocation26] sm:$0x3] %vm395_vm6, %v406_v1  ;;  %v415_v2 = vperm.slane %v406_v1, 1  ;;  %v408_v3 = vperm.slane %v406_v1, 0 }
 0x264   :  { %420 = vperm.xlu0 %753, %v415_v2   ;;  %413 = vperm.xlu2 %752, %v408_v3  }
 0x26c   :  { %551 = vrot.lane.b32.xlu2 %v528_v30, %s1193_s13 }
 0x2be   :  { %v414_v22 = vpop.permute.xlu2 %413 }
 0x2bf   :  { %v422_v25 = vmul.f32 %v414_v22, %v1370_v13 }
 0x2c1   :  { %v424_v26 = vsel %vm333_vm1, %v422_v25, 0.0 }
 0x2c2   :  { %v425_v29 = vrot.slane %v424_v26, 4 }
 0x2c4   :  { %v426_v31 = vadd.f32 %v425_v29, %v424_v26 }
 0x2c6   :  { %v427_v34 = vrot.slane %v426_v31, 2  ;;  %v552_v61 = vpop.permute.xlu2 %551 }
 0x2c8   :  { %v428_v37 = vadd.f32 %v427_v34, %v426_v31 }
 0x2ca   :  { %v429_v39 = vrot.slane %v428_v37, 1 }
 0x2cc   :  { %v430_v42 = vadd.f32 %v429_v39, %v428_v37 }
 0x2d6   :  { %v421_v32 = vpop.permute.xlu0 %420 }
 0x2d7   :  { %v423_v33 = vmul.f32 %v421_v32, %v1377_v14  ;;  %v757_v14 = vld [vmem:[#allocation19] ss:$0 sm:$0xff] }
 0x2d9   :  { %v431_v35 = vsel %vm333_vm1, %v423_v33, 0.0 }
 0x2da   :  { %v432_v36 = vrot.slane %v431_v35, 4 }
 0x2dc   :  { %v433_v13 = vadd.f32 %v432_v36, %v431_v35 }
 0x2de   :  { %v434_v38 = vrot.slane %v433_v13, 2 }
 0x2e0   :  { %v435_v40 = vadd.f32 %v434_v38, %v433_v13 }
 0x2e2   :  { %v436_v41 = vrot.slane %v435_v40, 1 }
 0x2e4   :  { %v437_v43 = vadd.f32 %v436_v41, %v435_v40 }
 0x2e6   :  { %v450_v44 = vsel %vm391_vm4, %v437_v43, %v430_v42 }
 0x2e7   :  { %721 = vmatmul.msk.f32.vlgmr.msra.gmra.mxu3 %vm333_vm1, %v450_v44  ;;  %725 = vmatmul.msk.f32.vlgmr.msra.gmra.mxu0 %vm333_vm1, %v450_v44 }
 0x2ef   :  { %727 = vmatmul.msk.f32.vlgmr.msrb.gmra.mxu3 %vm473_vm7, %v1388_v52 }
 0x364   :  { %v607_v17 = vpop.f32.mrf.mxu0 }
 0x36a   :  { %v470_v46 = vpop.f32.mrf.mxu3 }
 0x36b   :  { %v495_v47 = vadd.f32 %v494_v45, %v470_v46 }
 0x36d   :  { %v501_v48 = vadd.f32 %v757_v14, %v495_v47 }
 0x36f   :  { %v530_v49 = vadd.f32 %v528_v30, %v501_v48 }
 0x371   :  { %v724_v50 = vmul.f32 -1.442695, %v530_v49 }
 0x372   :  { %v651_v21 = vpop.f32.mrf.mxu3 }
 0x373   :  { %767 = vpow2.f32 %v724_v50 }
 0x379   :  { %v768_v51 = vpop.eup %767 }
 0x37a   :  { %v534_v53 = vadd.f32 1.0, %v768_v51 }
 0x37c   :  { %769 = vrcp.f32 %v534_v53  ;;  %v546_v57 = vand.u32 2147483648, %v534_v53  ;;  %v544_v59 = vand.u32 2147483647, %v534_v53  ;;  %vm540_vm9 = vweird.f32 %v534_v53 }
 0x37e   :  { %v547_v52 = vor.u32 1.1754944e-38, %v546_v57  ;;  %vm545_vm11 = vcmp.eq.f32.partialorder %v544_v59, 8.507059e+37 }
 0x382   :  { %v770_v54 = vpop.eup %769 }
 0x383   :  { %v536_v55 = vmul.f32 %v770_v54, %v534_v53  ;;  %vm541_vm8 = vweird.f32 %v770_v54 }
 0x384   :  { %vm542_vm10 = vmor %vm540_vm9, %vm541_vm8 }
 0x385   :  { %v537_v56 = vsub.f32 1.0, %v536_v55 }
 0x387   :  { %v538_v58 = vmul.f32 %v770_v54, %v537_v56 }
 0x389   :  { %v539_v60 = vadd.f32 %v770_v54, %v538_v58 }
 0x38b   :  { %v543_v62 = vsel %vm542_vm10, %v770_v54, %v539_v60 }
 0x38c   :  { %v548_v63 = vsel %vm545_vm11, %v547_v52, %v543_v62 }
 0x38d   :  { %v554_v0 = vmul.f32 %v552_v61, %v548_v63  ;;  %v561_v10 = vsub.f32 1.0, %v548_v63  ;;  %v570_v12 = vmul.f32 %v568_v8, %v548_v63 }
 0x38f   :  { %556 = vrot.lane.b32.xlu2 %v554_v0, %s1193_s13 }
 0x3e9   :  { %v557_v1 = vpop.permute.xlu2 %556 }
 0x3ea   :  { %v559_v2 = vadd.f32 %v557_v1, %v501_v48 }
 0x3ec   :  { %771 = vtanh.f32 %v559_v2 }
 0x3f2   :  { %v772_v3 = vpop.eup %771 }
 0x3f3   :  { %563 = vrot.lane.b32.xlu2 %v772_v3, %s1194_s16 }
 0x44d   :  { %v564_v11 = vpop.permute.xlu2 %563 }
 0x44e   :  { %v566_v15 = vmul.f32 %v564_v11, %v561_v10 }
 0x450   :  { %v571_v16 = vadd.f32 %v570_v12, %v566_v15 }
 0x452   :  { %573 = vrot.lane.b32.xlu0 %v571_v16, %s1194_s16 }
 0x4c4   :  { %v574_v9 = vpop.permute.xlu0 %573 }
 0x4c5   :  { %577 = vst.msk [vmem:[#allocation24] sm:$0x3] %vm576_vm12, %v574_v9  ;;  %726 = vmatmul.msk.f32.vlgmr.msra.gmra.mxu1 %vm301_vm0, %v574_v9 }
 0x4c6   :  { %683 = dma.vmem_to_hbm [thread:$0]  %s679_s30, 32, %s681_s14, [#allocation25]  }
 0x4c7   :  { %694 = dma.vmem_to_hbm [thread:$0]  %s690_s21, 32, %s692_s11, [#allocation25]  }
 0x542   :  { %v629_v18 = vpop.f32.mrf.mxu1 }
 0x543   :  { %v630_v19 = vadd.f32 %v629_v18, %v607_v17 }
 0x545   :  { %v654_v22 = vadd.f32 %v651_v21, %v630_v19 }
 0x547   :  { %v659_v23 = vadd.f32 %v758_v20, %v654_v22 }
 0x549   :  { %661 = vst.msk [vmem:[#allocation23] sm:$0x3] %vm660_vm13, %v659_v23 }
 0x54a   :  { %672 = dma.vmem_to_hbm [thread:$0]  %s668_s5, 32, %s670_s24, [#allocation4]  }
 0x54b   :  { %1171 = dma.done.wait [#allocation4], 32  }
 0x54c   :  { %1172 = vsyncadd [#allocation4], 4294967264 }
 0x54d   :  { %1173 = dma.done.wait [#allocation25], 64  }
 0x54e   :  { %1174 = vsyncadd [#allocation25], 4294967232 }
 0x54f   :  { %707 = vsyncpa [#allocation3], 1 }
 0x550   :  { %708 = vsyncpa [#allocation6], 1 }
 0x551   :  { %709 = vsyncpa [#allocation9], 1 }
 0x552   :  { %710 = vsyncpa [#allocation12], 1 }
 0x553   :  { %711 = vsyncpa [#allocation15], 1 }
 0x554   :  { %712 = vsyncpa [#allocation18], 1 }
 0x555   :  { %713 = vsyncpa [#allocation21], 1 }
 0x556   :  { %714 = vsyncpa [#allocation4], 1 }
 0x557   :  { %715 = vsyncpa [#allocation25], 1 }

</bundles_post_ra>
